<compile_context>
chip_gen: v5e
topology: v5e:2x2
jax: 0.10.0
libtpu: 0.0.40
codegen_flags: <defaults>
</compile_context>

<pallas_src>
import jax
import jax.numpy as jnp
from jax.experimental import pallas as pl
from jax.experimental.pallas import tpu as pltpu

LANES = 128                 # vreg lane width — last dim of the lane-dense slab
SUBLANES = 8                # vreg sublane count — row-granularity for blocks
DEFAULT_TILE_ROWS = 8192    # 8192 x 128 f32 = 4 MiB per buffer
TINY_N = SUBLANES * LANES   # below this, plain XLA beats kernel dispatch cost


def _round_up(a, b):
    return ((a + b - 1) // b) * b


def _linear_kernel(w_ref, b_ref, x_ref, o_ref):
    # w_ref, b_ref: SMEM scalars; x_ref, o_ref: (tile_rows, 128) VMEM tiles.
    w = w_ref[0]
    b = b_ref[0]
    # Pure VPU elementwise scale + shift; explicit cast back to output dtype.
    o_ref[...] = (x_ref[...] * w + b).astype(o_ref.dtype)


def linear_regression_forward(x, weight, bias, *, tile_rows=DEFAULT_TILE_ROWS):
    """x: (N, 1); weight: (1, 1); bias: (1,) -> (N, 1), same dtype as x."""
    n, f = x.shape
    assert f == 1, "nn.Linear(1, 1) expects in_features == 1"

    w_scalar = weight.reshape((1,)).astype(jnp.float32)
    b_scalar = bias.reshape((1,)).astype(jnp.float32)

    # Tiny-input fast path: pallas_call dispatch + pipeline prologue dwarf the
    # FLOPs; a single fused XLA multiply-add is strictly faster.
    if n < TINY_N:
        return (x * w_scalar[0] + b_scalar[0]).astype(x.dtype)

    # Lane-dense slab.  Aligned N: free bitcast, no pad, no trailing slice.
    # Ragged N: pad only to the next multiple of 128 (one vreg row max waste).
    rows = pl.cdiv(n, LANES)
    n_padded = rows * LANES

    x_flat = x.reshape((n,))
    if n_padded != n:
        x_flat = jnp.pad(x_flat, (0, n_padded - n))
    x2d = x_flat.reshape((rows, LANES))

    # Tile-size choice:
    #  * cap at tile_rows (default 4 MiB/buffer) to amortize per-step overhead,
    #  * aim for >= 2 grid steps so both v7x TensorCores get work,
    #  * keep tile rows a multiple of 8 sublanes.
    if rows >= 2 * SUBLANES:
        min_split = _round_up(pl.cdiv(rows, 2), SUBLANES)
    else:
        min_split = _round_up(rows, SUBLANES)
    tile_rows = max(SUBLANES, min(tile_rows, min_split))
    grid = (pl.cdiv(rows, tile_rows),)

    itemsize = jnp.dtype(x.dtype).itemsize
    cost = pl.CostEstimate(
        flops=2 * rows * LANES,                      # one mul + one add per elem
        transcendentals=0,
        bytes_accessed=2 * rows * LANES * itemsize,  # read x + write y
    )

    out2d = pl.pallas_call(
        _linear_kernel,
        out_shape=jax.ShapeDtypeStruct((rows, LANES), x.dtype),
        grid=grid,
        in_specs=[
            pl.BlockSpec(memory_space=pltpu.SMEM),            # weight scalar
            pl.BlockSpec(memory_space=pltpu.SMEM),            # bias scalar
            pl.BlockSpec((tile_rows, LANES), lambda i: (i, 0)),
        ],
        out_specs=pl.BlockSpec((tile_rows, LANES), lambda i: (i, 0)),
        compiler_params=pltpu.CompilerParams(
            dimension_semantics=("parallel",),   # shard row tiles across TCs on v7x
            vmem_limit_bytes=32 * 1024 * 1024,   # v5e default is only 16 MiB
        ),
        cost_estimate=cost,
    )(w_scalar, b_scalar, x2d)

    if n_padded == n:
        return out2d.reshape((n, 1))
    return out2d.reshape((n_padded, 1))[:n]


if __name__ == "__main__":
    key = jax.random.PRNGKey(0)
    kx0, kw, kb, kx1, kx2 = jax.random.split(key, 5)

    # Deterministic parameter init (mimics nn.Linear's uniform(-bound, bound)
    # with bound = 1/sqrt(in_features) = 1).
    weight = jax.random.uniform(kw, (1, 1), dtype=jnp.float32, minval=-1.0, maxval=1.0)
    bias = jax.random.uniform(kb, (1,), dtype=jnp.float32, minval=-1.0, maxval=1.0)

    # 1) Tiny batch -> plain-XLA fast path (like a typical nn.Linear(1,1) call).
    x0 = jax.random.normal(kx0, (8, 1), dtype=jnp.float32)
    y0 = jax.block_until_ready(linear_regression_forward(x0, weight, bias))
    assert y0.shape == (8, 1)
    assert jnp.allclose(y0, x0 @ weight.T + bias, atol=1e-6, rtol=1e-6)

    # 2) Lane-aligned batch -> Pallas path with no pad / no trailing slice,
    #    split into >= 2 grid steps (32 rows -> 2 x 16-row tiles).
    N1 = 4096
    x1 = jax.random.normal(kx1, (N1, 1), dtype=jnp.float32)
    y1 = jax.block_until_ready(linear_regression_forward(x1, weight, bias))
    assert y1.shape == (N1, 1)
    assert jnp.allclose(y1, x1 @ weight.T + bias, atol=1e-6, rtol=1e-6)

    # 3) Ragged batch with a small tile override -> exercises minimal lane
    #    padding, a multi-step grid, and a partial final row block.
    N2 = 33000  # -> 258 rows of 128 (24 padded lanes), tile 64 -> grid=(5,)
    x2 = jax.random.normal(kx2, (N2, 1), dtype=jnp.float32)
    y2 = jax.block_until_ready(
        linear_regression_forward(x2, weight, bias, tile_rows=64))
    assert y2.shape == (N2, 1)
    assert jnp.allclose(y2, x2 @ weight.T + bias, atol=1e-6, rtol=1e-6)

    print("KERNEL_OK")
</pallas_src>

<mosaic_0001>
module attributes {stable_mosaic.version = 11 : i64} {
  func.func @_linear_kernel(%arg0: i32, %arg1: memref<1xf32, #tpu.memory_space<smem>>, %arg2: memref<1xf32, #tpu.memory_space<smem>>, %arg3: memref<16x128xf32, #tpu.memory_space<vmem>>, %arg4: memref<16x128xf32, #tpu.memory_space<vmem>>) attributes {dimension_semantics = [#tpu.dimension_semantics<parallel>], iteration_bounds = array<i64: 2>, scalar_prefetch = 0 : i64, scratch_operands = 0 : i64, tpu.core_type = #tpu.core_type<tc>, window_params = [{transform_indices = @transform_0, window_bounds = array<i64: 1>}, {transform_indices = @transform_1, window_bounds = array<i64: 1>}, {transform_indices = @transform_2, window_bounds = array<i64: 16, 128>}, {transform_indices = @transform_3, window_bounds = array<i64: 16, 128>}]} {
    %c0 = arith.constant 0 : index
    %0 = memref.load %arg1[%c0] : memref<1xf32, #tpu.memory_space<smem>>
    %c0_0 = arith.constant 0 : index
    %1 = memref.load %arg2[%c0_0] : memref<1xf32, #tpu.memory_space<smem>>
    %c0_1 = arith.constant 0 : index
    %c0_2 = arith.constant 0 : index
    %2 = vector.load %arg3[%c0_1, %c0_2] : memref<16x128xf32, #tpu.memory_space<vmem>>, vector<16x128xf32>
    %3 = vector.broadcast %0 : f32 to vector<16x128xf32>
    %4 = arith.mulf %2, %3 : vector<16x128xf32>
    %5 = vector.broadcast %1 : f32 to vector<16x128xf32>
    %6 = arith.addf %4, %5 : vector<16x128xf32>
    %c0_3 = arith.constant 0 : index
    %c0_4 = arith.constant 0 : index
    %7 = vector.load %arg4[%c0_3, %c0_4] : memref<16x128xf32, #tpu.memory_space<vmem>>, vector<16x128xf32>
    tpu.vector_store %arg4[%c0_3, %c0_4], %6 {strides = array<i32>} : memref<16x128xf32, #tpu.memory_space<vmem>>, vector<16x128xf32>,
    return
  }
  func.func @transform_0(%arg0: i32) -> i32 {
    %c0_i32 = arith.constant 0 : i32
    %c0_i32_0 = arith.constant 0 : i32
    return %c0_i32 : i32
  }
  func.func @transform_1(%arg0: i32) -> i32 {
    %c0_i32 = arith.constant 0 : i32
    %c0_i32_0 = arith.constant 0 : i32
    return %c0_i32 : i32
  }
  func.func @transform_2(%arg0: i32) -> (i32, i32) {
    %c0_i32 = arith.constant 0 : i32
    %c0_i32_0 = arith.constant 0 : i32
    return %arg0, %c0_i32 : i32, i32
  }
  func.func @transform_3(%arg0: i32) -> (i32, i32) {
    %c0_i32 = arith.constant 0 : i32
    %c0_i32_0 = arith.constant 0 : i32
    return %arg0, %c0_i32 : i32, i32
  }
}

</mosaic_0001>

<bundles_post_ra>
// kernel: tpu_custom_call.1
= control target key start
LH: loop header
LB: loop body
LE: loop exit
PB: predicated region body
PF: predicated region fallthrough
CT: control target
= control target key end

     0   :  { %s617_s0 = inlined_call_operand.<no memory space> [shape: f32[1], index: 0, kind: input, shape index: {}]   ;;  %s618_s1 = inlined_call_operand.<no memory space> [shape: f32[1], index: 1, kind: input, shape index: {}]   ;;  %s619_s2 = inlined_call_operand.hbm [shape: f32[32,128], index: 2, kind: input, shape index: {}]   ;;  %s620_s3 = inlined_call_operand.hbm [shape: f32[32,128], index: 3, kind: output, shape index: {}]  }
   0x1   :  { %8 = sst [smem:[#allocation2]] %s617_s0 }
   0x2   :  { %9 = sst [smem:[#allocation3]] %s618_s1 }
   0x3   :  { %10 = vsyncpa [#allocation5], 0 }
   0x4   :  { %12 = vsyncpa [#allocation5 + $0x1], 0 }
   0x5   :  { %13 = vsyncpa [#allocation6], 0 }
   0x6   :  { %15 = vsyncpa [#allocation6 + $0x1], 0  ;;  %s490_s16 = smov 0   ;;  %s492_s17 = smov 0  }
   0x7   :  { %s494_s18 = smov 0   ;;  %s496_s19 = smov 0  }
   0x8 LB: > { %s511_s0 = sadd.s32 4294967295, %s458_s19   ;;  %s296_s1 = sadd.s32 4294967294, %s458_s19   ;;  %s458_s19 = sphi %s496_s19, %s630_s19   ;;  %s454_s18 = sphi %s494_s18, %s629_s18   ;;  %s450_s17 = sphi %s492_s17, %s628_s17   ;;  %s446_s16 = sphi %s490_s16, %s627_s16  }
   0x9   : > { %s515_s20 = sadd.s32 1, %s458_s19   ;;  %s70_s21 = sadd.s32 1, %s454_s18 }
   0xa   : > { %s67_s22 = ssub.s32 %s458_s19, %s515_s20  ;;  %p77_p0 = scmp.ne.s32.totalorder %s454_s18, %s450_s17 }
   0xb   : > { %p68_p1 = scmp.eq.s32.totalorder %s67_s22, 0  ;;  %p78_p2 = scmp.eq.s32.totalorder %s458_s19, 0 }
   0xc   : > { %p83_p3 = scmp.ne.s32.totalorder %s450_s17, %s446_s16  ;;  %p84_p4 = scmp.eq.s32.totalorder %s511_s0, 0 }
   0xd   : > { %s527_s23 = scalar_select %p68_p1, %s454_s18, %s70_s21  }
   0xe   : > { %p529_p5 = por %p78_p2, %p77_p0  ;;  %p533_p6 = por %p84_p4, %p83_p3 }
   0xf   : > { %p107_p7 = scmp.eq.s32.totalorder %s511_s0, 1  ;;  %p113_p8 = scmp.eq.s32.totalorder %s296_s1, 1 }
  0x10   : > { %p324_p10 = scmp.lt.s32.totalorder %s458_s19, 2  ;;  %s139_s28 = sand.u32 1, %s454_s18  }
  0x11   : > { %p540_p11 = por %p107_p7, %p77_p0  ;;  %p544_p12 = por %p113_p8, %p83_p3 }
  0x12   : > { %s310_s29 = sshll.u32 %s458_s19, 4  ;;  %s299_s30 = sshll.u32 %s139_s28, 4 }
  0x13   : > { %s148_s6 = scalar_lea.hbm %s619_s2, %s310_s29  ;;  %s143_s8 = scalar_lea.vmem [#allocation4], %s299_s30 }
  0x14   : > { %s149_s7 = sshll.u32 %s148_s6, 4  ;;  %s151_s9 = sshll.u32 %s143_s8, 4  ;;  %s150_s7 = int_to_ptr.hbm [resolvable:$true] %s149_s7  ;;  %s152_s9 = int_to_ptr.vmem [resolvable:$true] %s151_s9 }
  0x15   : > { %p555_p13 = pnand %p324_p10, %p529_p5  ;;  %p302_p0 = scmp.ge.s32.totalorder %s458_s19, 1 }
  0x16   : > { %p159_p1 = scmp.lt.s32.totalorder %s458_s19, 3  ;;  %s140_s11 = scalar_lea.sflag [#allocation5], %s139_s28 }
  0x17   : > { %s362_s12 = sshra.s32 %s150_s7, 4  ;;  %p366_p3 = pneg %p555_p13  ;;  %s363_s12 = int_to_ptr.hbm [resolvable:$true] %s362_s12 }
  0x18   : > { %s364_s13 = scalar_lea.hbm %s363_s12, 16  ;;  %s369_s1 = scalar_lea.hbm %s619_s2, 32 }
  0x19   : > { %p365_p2 = scmp.ne.s32.totalorder %s363_s12, %s364_s13  ;;  %p370_p5 = scmp.lt.s32.totalorder %s363_s12, %s619_s2 }
  0x1a   : > { %p371_p8 = scmp.lt.s32.totalorder %s369_s1, %s364_s13 }
  0x1b   : > { %p367_p4 = pnand %p366_p3, %p365_p2 }
  0x1c   : > { %p372_p10 = por %p371_p8, %p370_p5 }
  0x1d   : > { %p368_p7 = pneg %p367_p4 }
  0x1f   : > { %p373_p9 = pnand %p372_p10, %p368_p7 }
  0x21   : > { %376 = shalt.err (!%p373_p9)
}
  0x22   : > { %s460_s24 = smov 128   ;;  %s461_s28 = smov 8  }
  0x23   : > { %319 = dma.hbm_to_vmem [thread:$0]  (!%p555_p13), %s150_s7, 256, %s152_s9, %s140_s11, %s460_s24, %s460_s24, %s461_s28  }
  0x24   : > { %p160_p2 = pnand %p302_p0, %p159_p1 }
  0x25   : > { %s576_s29 = sand.u32 (!%p160_p2), 1, %s450_s17  }
  0x26   : > { %163 = sbr.rel (%p160_p2) target bundleno = 61 (0x3d), region = 32  ;;  %s303_s30 = sshll.u32 (!%p160_p2), %s576_s29, 4 }
  0x27   : > { %s166_s4 = scalar_lea.sflag (!%p160_p2), [#allocation5], %s576_s29  ;;  %s169_s5 = scalar_lea.vmem (!%p160_p2), [#allocation4], %s303_s30 }
  0x2b   : > { %437 = dma.done.wait (%p533_p6), %s166_s4, 256  }
  0x2c   : > { %439 = vsyncadd (%p533_p6), %s166_s4, 4294967040  ;;  %s195_s6 = sld [smem:[#allocation2]]  ;;  %s311_s8 = sshll.u32 %s511_s0, 4  ;;  %v197_v0 = vld [vmem:[%s169_s5] sm:$0xff]  ;;  %v198_v2 = vld [vmem:[%s169_s5 + $0x8] sm:$0xff] }
  0x2d   : > { %s196_s7 = sld [smem:[#allocation3]]  ;;  %s219_s11 = scalar_lea.hbm %s620_s3, %s311_s8 }
  0x2e   : > { %s192_s12 = scalar_lea.vmem [#allocation7], %s303_s30  ;;  %s222_s25 = sshll.u32 %s219_s11, 4  ;;  %s223_s25 = int_to_ptr.hbm [resolvable:$true] %s222_s25 }
  0x2f   : > { %s220_s13 = sshll.u32 %s192_s12, 4  ;;  %s208_s0 = scalar_lea.sflag [#allocation6], %s576_s29  ;;  %s221_s13 = int_to_ptr.vmem [resolvable:$true] %s220_s13 }
  0x30   : > { %s406_s14 = sshra.s32 %s223_s25, 4  ;;  %s412_s22 = scalar_lea.hbm %s620_s3, 32  ;;  %s407_s14 = int_to_ptr.hbm [resolvable:$true] %s406_s14 }
  0x31   : > { %s408_s15 = scalar_lea.hbm %s407_s14, 16  ;;  %p413_p0 = scmp.lt.s32.totalorder %s407_s14, %s620_s3 }
  0x32   : > { %v199_v1 = vstv %s195_s6  ;;  %p409_p6 = scmp.ne.s32.totalorder %s407_s14, %s408_s15  ;;  %p414_p1 = scmp.lt.s32.totalorder %s412_s22, %s408_s15 }
  0x33   : > { %v200_v3 = vmul.f32 %v199_v1, %v197_v0  ;;  %v202_v4 = vstv %s196_s7  ;;  %v201_v5 = vmul.f32 %v199_v1, %v198_v2 }
  0x34   : > { %p410_p9 = pnand %p409_p6, %p540_p11  ;;  %p415_p3 = por %p414_p1, %p413_p0 }
  0x35   : > { %v203_v6 = vadd.f32 %v202_v4, %v200_v3  ;;  %v204_v7 = vadd.f32 %v202_v4, %v201_v5 }
  0x36   : > { %p411_p13 = pneg %p410_p9 }
  0x37   : > { %205 = vst [vmem:[%s192_s12] sm:$0xff] %v203_v6 }
  0x38   : > { %206 = vst [vmem:[%s192_s12 + $0x8] sm:$0xff] %v204_v7  ;;  %p416_p4 = pnand %p415_p3, %p411_p13 }
  0x3a   : > { %419 = shalt.err (!%p416_p4)
}
  0x3b   : > { %s462_s29 = smov 128   ;;  %s463_s30 = smov 8  }
  0x3c   : > { %314 = dma.vmem_to_hbm [thread:$0]  (%p540_p11), %s221_s13, 256, %s223_s25, %s208_s0, %s462_s29, %s462_s29, %s463_s30  }
  0x3d PF: > { %s237_s4 = sand.u32 1, %s446_s16   ;;  %p626_p7 = scmp.ge.s32.totalorder %s458_s19, 2 }
  0x3e   : > { %s238_s5 = scalar_lea.sflag [#allocation6], %s237_s4 }
  0x3f   : > { %p321_p5 = pnand %p626_p7, %p544_p12 }
  0x41   : > { %p322_p8 = pneg %p321_p5 }
  0x43   : > { %441 = dma.done.wait (%p322_p8), %s238_s5, 256  }
  0x44   : > { %443 = vsyncadd (%p322_p8), %s238_s5, 4294967040  ;;  %p18_p10 = scmp.ge.s32.totalorder %s515_s20, 4   ;;  %s627_s16 = smov %s450_s17 }
  0x45   : > { %s628_s17 = smov %s454_s18  ;;  %s629_s18 = smov %s527_s23 }
  0x46   : > { %s630_s19 = smov %s515_s20  ;;  %20 = sbr.rel (!%p18_p10) target bundleno = 8 (0x8), region = 77 }
  0x4b   :  { %244 = vsyncpa [#allocation5], 1 }
  0x4c   :  { %246 = vsyncpa [#allocation5 + $0x1], 1 }
  0x4d   :  { %247 = vsyncpa [#allocation6], 1 }
  0x4e   :  { %249 = vsyncpa [#allocation6 + $0x1], 1 }

</bundles_post_ra>
